<compile_context>
chip_gen: v7x
topology: tpu7x:2x2x1
jax: 0.10.0
libtpu: 0.0.40
codegen_flags: <defaults>
</compile_context>

<pallas_src>
import math
import functools

import jax
import jax.numpy as jnp
from jax.experimental import pallas as pl
from jax.experimental.pallas import tpu as pltpu


def _encoder_rnn_rollout_kernel(alpha_ref, x0_ref, i_ref, j_ref, o_ref, x_scr,
                                *, time_block):
    """One grid step = `time_block` RNN timesteps for one batch block.

    alpha_ref : (1,)            f32 SMEM   leak rate alpha
    x0_ref    : (tb, N)         f32 VMEM   initial state (same block every t-chunk)
    i_ref     : (TT, tb, N)     f32 VMEM   input drive for this time chunk
    j_ref     : (N, N)          bf16 VMEM  gain-folded recurrent weights (resident)
    o_ref     : (TT, tb, N)     f32 VMEM   trajectory output for this time chunk
    x_scr     : (tb, N)         f32 VMEM   carried state (scratch)
    """
    tc = pl.program_id(1)  # time-chunk index (innermost, sequential)

    @pl.when(tc == 0)
    def _():
        x_scr[...] = x0_ref[...]

    alpha = alpha_ref[0]
    one_minus_alpha = 1.0 - alpha

    def step(s, x):
        h = jnp.tanh(x).astype(j_ref.dtype)                 # EUP tanh -> bf16 MXU operand
        rec = jnp.dot(h, j_ref[...],
                      preferred_element_type=jnp.float32)   # MXU, f32 accumulate
        x_new = one_minus_alpha * x + alpha * (rec + i_ref[s])   # f32 combine
        o_ref[s] = x_new.astype(o_ref.dtype)
        return x_new

    x_scr[...] = jax.lax.fori_loop(0, time_block, step, x_scr[...], unroll=True)


def encoder_rnn_rollout(x0, I_seq, J, *, alpha, gain,
                        batch_block=None, time_block=None,
                        matmul_dtype=jnp.bfloat16):
    """Run T timesteps of encoder_rnn.forward inside a single pallas_call.

    x0    : (B, N) f32 initial state
    I_seq : (T, B, N) f32 input drive per timestep
    J     : (N, N) f32 recurrent weights
    Returns the full trajectory (T, B, N) f32; traj[t] is the state after
    step t (identical to calling the module forward T times in eval mode).
    """
    T, B, N = I_seq.shape
    assert x0.shape == (B, N) and J.shape == (N, N)
    assert N % 128 == 0, "embedding_dim must be a multiple of 128 (lane dim)"

    # --- batch tile ------------------------------------------------------
    if batch_block is None:
        # Split the batch in two when big enough so the "parallel" axis can
        # shard across two TensorCores on v7x; otherwise keep the whole batch.
        if B >= 32 and B % 2 == 0 and (B // 2) % 8 == 0:
            tb = B // 2
        else:
            tb = B
    else:
        tb = batch_block
    assert B % tb == 0, "batch_block must divide B"
    assert tb == B or tb % 8 == 0, "batch_block must respect the (8,128) rule"
    num_b = B // tb

    # --- time chunk ------------------------------------------------------
    TT = min(T, 8) if time_block is None else max(1, min(time_block, T))
    T_pad = TT * pl.cdiv(T, TT)
    if T_pad != T:
        I_pad = jnp.concatenate(
            [I_seq, jnp.zeros((T_pad - T, B, N), I_seq.dtype)], axis=0)
    else:
        I_pad = I_seq
    num_t = T_pad // TT

    # Fold gain into the weights once; bf16 storage/stream, f32 accumulation.
    J_op = (J * gain).astype(matmul_dtype)
    alpha_arr = jnp.asarray([alpha], dtype=jnp.float32)

    kernel = functools.partial(_encoder_rnn_rollout_kernel, time_block=TT)

    traj = pl.pallas_call(
        kernel,
        out_shape=jax.ShapeDtypeStruct((T_pad, B, N), x0.dtype),
        grid_spec=pl.GridSpec(
            # NOTE: time must stay the innermost ("arbitrary") axis — the
            # recurrent state is carried in scratch and re-seeded at t == 0.
            grid=(num_b, num_t),
            in_specs=[
                # alpha: runtime scalar in SMEM (no recompile per alpha)
                pl.BlockSpec(memory_space=pltpu.MemorySpace.SMEM),
                # initial state: constant over t, indexed by batch block
                pl.BlockSpec((tb, N), lambda b, t: (b, 0)),
                # input drive: one chunk of TT timesteps per grid step
                pl.BlockSpec((TT, tb, N), lambda b, t: (t, b, 0)),
                # weights: constant block index -> loaded into VMEM once,
                # never re-DMA'd across time chunks
                pl.BlockSpec((N, N), lambda b, t: (0, 0)),
            ],
            out_specs=pl.BlockSpec((TT, tb, N), lambda b, t: (t, b, 0)),
            scratch_shapes=[pltpu.VMEM((tb, N), jnp.float32)],
        ),
        compiler_params=pltpu.CompilerParams(
            # batch blocks are independent (megacore-shardable on v7x);
            # time is a sequential carry through scratch -> "arbitrary".
            dimension_semantics=("parallel", "arbitrary")),
    )(alpha_arr, x0, I_pad, J_op)

    return traj[:T] if T_pad != T else traj


def encoder_rnn_forward(x, I=None, *, J, alpha, gain):
    """Single-step forward matching encoder_rnn.forward (eval mode)."""
    if I is None:
        I = jnp.zeros_like(x)
    traj = encoder_rnn_rollout(x, I[None], J, alpha=alpha, gain=gain)
    return traj[0]


def encoder_rnn_reference_rollout(x0, I_seq, J, *, alpha, gain,
                                  matmul_dtype=jnp.bfloat16):
    """Pure-JAX reference.  matmul_dtype=None -> full f32 (true module math)."""
    Jg = J * gain
    if matmul_dtype is not None:
        Jg = Jg.astype(matmul_dtype)

    def step(x, I_t):
        h = jnp.tanh(x)
        if matmul_dtype is not None:
            h = h.astype(matmul_dtype)
        rec = jnp.dot(h, Jg, preferred_element_type=jnp.float32)
        x_new = (1.0 - alpha) * x + alpha * (rec + I_t)
        return x_new, x_new

    _, traj = jax.lax.scan(step, x0, I_seq)
    return traj


if __name__ == "__main__":
    # Hyperparameters mirroring encoder_rnn.__init__
    tau = 10.0
    delta_t = 1.0
    embedding_dim = 128
    hyper_gain = 1.0
    p = 1.0
    init_gain = 1.0
    batch = 8
    T = 16                                       # rollout length (2 time chunks)

    alpha = delta_t / tau                        # 0 < alpha < 1
    gain = hyper_gain / (embedding_dim ** p)     # registered_property `gain`
    assert 0.0 < alpha < 1.0

    key = jax.random.PRNGKey(0)
    kx, ki, kj = jax.random.split(key, 3)

    # J = randn(n, n) * sqrt(n) * init_gain (r=-1, 'randn', no implicit gain)
    J = (jax.random.normal(kj, (embedding_dim, embedding_dim), jnp.float32)
         * math.sqrt(embedding_dim) * init_gain)
    x0 = jax.random.normal(kx, (batch, embedding_dim), jnp.float32)
    I_seq = jax.random.normal(ki, (T, batch, embedding_dim), jnp.float32)

    # Multi-step rollout (J resident in VMEM, TT=8 timesteps per grid step).
    traj = encoder_rnn_rollout(x0, I_seq, J, alpha=alpha, gain=gain)
    traj = jax.block_until_ready(traj)
    assert traj.shape == (T, batch, embedding_dim)

    # Check vs. a bf16-matched JAX reference (tight) ...
    ref_bf16 = encoder_rnn_reference_rollout(x0, I_seq, J, alpha=alpha, gain=gain)
    assert jnp.allclose(traj, ref_bf16, atol=5e-3, rtol=5e-3), \
        "rollout mismatch vs bf16-matched reference"

    # ... and vs. the true f32 module math (looser, covers bf16 drift).
    ref_f32 = encoder_rnn_reference_rollout(x0, I_seq, J, alpha=alpha, gain=gain,
                                            matmul_dtype=None)
    assert jnp.allclose(traj, ref_f32, atol=2.5e-2, rtol=2.5e-2), \
        "rollout drift vs f32 reference exceeds tolerance"

    # Single-step forward (module-equivalent call; exercises T=1 / TT=1 path).
    out1 = encoder_rnn_forward(x0, I_seq[0], J=J, alpha=alpha, gain=gain)
    out1 = jax.block_until_ready(out1)
    assert out1.shape == (batch, embedding_dim)
    assert jnp.allclose(out1, ref_bf16[0], atol=5e-3, rtol=5e-3), \
        "single-step mismatch vs reference"

    print("KERNEL_OK")
</pallas_src>

<mosaic_0001>
module attributes {stable_mosaic.version = 11 : i64} {
  func.func @_encoder_rnn_rollout_kernel(%arg0: i32, %arg1: i32, %arg2: memref<1xf32, #tpu.memory_space<smem>>, %arg3: memref<8x128xf32, #tpu.memory_space<vmem>>, %arg4: memref<8x8x128xf32, #tpu.memory_space<vmem>>, %arg5: memref<128x128xbf16, #tpu.memory_space<vmem>>, %arg6: memref<8x8x128xf32, #tpu.memory_space<vmem>>, %arg7: memref<8x128xf32, #tpu.memory_space<vmem>>) attributes {dimension_semantics = [#tpu.dimension_semantics<parallel>, #tpu.dimension_semantics<arbitrary>], iteration_bounds = array<i64: 1, 2>, scalar_prefetch = 0 : i64, scratch_operands = 1 : i64, tpu.core_type = #tpu.core_type<tc>, window_params = [{transform_indices = @transform_0, window_bounds = array<i64: 1>}, {transform_indices = @transform_1, window_bounds = array<i64: 8, 128>}, {transform_indices = @transform_2, window_bounds = array<i64: 8, 8, 128>}, {pipeline_mode = #tpu.pipeline_mode<synchronous>, transform_indices = @transform_3, window_bounds = array<i64: 128, 128>}, {transform_indices = @transform_4, window_bounds = array<i64: 8, 8, 128>}]} {
    %c0_i32 = arith.constant 0 : i32
    %0 = arith.cmpi eq, %arg1, %c0_i32 : i32
    %1 = arith.extui %0 : i1 to i32
    %c0_i32_0 = arith.constant 0 : i32
    %2 = arith.cmpi ne, %1, %c0_i32_0 : i32
    scf.if %2 {
      %c0_62 = arith.constant 0 : index
      %c0_63 = arith.constant 0 : index
      %143 = vector.load %arg3[%c0_62, %c0_63] : memref<8x128xf32, #tpu.memory_space<vmem>>, vector<8x128xf32>
      %c0_64 = arith.constant 0 : index
      %c0_65 = arith.constant 0 : index
      %144 = vector.load %arg7[%c0_64, %c0_65] : memref<8x128xf32, #tpu.memory_space<vmem>>, vector<8x128xf32>
      tpu.vector_store %arg7[%c0_64, %c0_65], %143 {strides = array<i32>} : memref<8x128xf32, #tpu.memory_space<vmem>>, vector<8x128xf32>,
    } else {
    }
    %c0 = arith.constant 0 : index
    %3 = memref.load %arg2[%c0] : memref<1xf32, #tpu.memory_space<smem>>
    %cst = arith.constant 1.000000e+00 : f32
    %4 = arith.subf %cst, %3 : f32
    %c0_1 = arith.constant 0 : index
    %c0_2 = arith.constant 0 : index
    %5 = vector.load %arg7[%c0_1, %c0_2] : memref<8x128xf32, #tpu.memory_space<vmem>>, vector<8x128xf32>
    %c0_i32_3 = arith.constant 0 : i32
    %6 = math.tanh %5 : vector<8x128xf32>
    %7 = arith.truncf %6 : vector<8x128xf32> to vector<8x128xbf16>
    %c0_4 = arith.constant 0 : index
    %c0_5 = arith.constant 0 : index
    %8 = vector.load %arg5[%c0_4, %c0_5] : memref<128x128xbf16, #tpu.memory_space<vmem>>, vector<128x128xbf16>
    %cst_6 = arith.constant dense<0.000000e+00> : vector<8x128xf32>
    %9 = tpu.matmul %7, %8, %cst_6 {dimension_numbers = #tpu.dot_dimension_numbers<[1], [0], [0], [1], [0, 0, 1, 1], [], []>} : vector<8x128xbf16>, vector<128x128xbf16>, vector<8x128xf32> -> vector<8x128xf32>
    %10 = vector.broadcast %4 : f32 to vector<8x128xf32>
    %11 = arith.mulf %10, %5 : vector<8x128xf32>
    %12 = arith.index_cast %c0_i32_3 : i32 to index
    %c0_7 = arith.constant 0 : index
    %c0_8 = arith.constant 0 : index
    %13 = vector.load %arg4[%12, %c0_7, %c0_8] : memref<8x8x128xf32, #tpu.memory_space<vmem>>, vector<1x8x128xf32>
    %14 = vector.shape_cast %13 : vector<1x8x128xf32> to vector<8x128xf32>
    %15 = arith.addf %9, %14 : vector<8x128xf32>
    %16 = vector.broadcast %3 : f32 to vector<8x128xf32>
    %17 = arith.mulf %16, %15 : vector<8x128xf32>
    %18 = arith.addf %11, %17 : vector<8x128xf32>
    %19 = arith.index_cast %c0_i32_3 : i32 to index
    %c0_9 = arith.constant 0 : index
    %c0_10 = arith.constant 0 : index
    %20 = vector.load %arg6[%19, %c0_9, %c0_10] : memref<8x8x128xf32, #tpu.memory_space<vmem>>, vector<1x8x128xf32>
    %21 = vector.shape_cast %20 : vector<1x8x128xf32> to vector<8x128xf32>
    %22 = vector.shape_cast %18 : vector<8x128xf32> to vector<1x8x128xf32>
    tpu.vector_store %arg6[%19, %c0_9, %c0_10], %22 {strides = array<i32>} : memref<8x8x128xf32, #tpu.memory_space<vmem>>, vector<1x8x128xf32>,
    %c1_i32 = arith.constant 1 : i32
    %23 = math.tanh %18 : vector<8x128xf32>
    %24 = arith.truncf %23 : vector<8x128xf32> to vector<8x128xbf16>
    %c0_11 = arith.constant 0 : index
    %c0_12 = arith.constant 0 : index
    %25 = vector.load %arg5[%c0_11, %c0_12] : memref<128x128xbf16, #tpu.memory_space<vmem>>, vector<128x128xbf16>
    %cst_13 = arith.constant dense<0.000000e+00> : vector<8x128xf32>
    %26 = tpu.matmul %24, %25, %cst_13 {dimension_numbers = #tpu.dot_dimension_numbers<[1], [0], [0], [1], [0, 0, 1, 1], [], []>} : vector<8x128xbf16>, vector<128x128xbf16>, vector<8x128xf32> -> vector<8x128xf32>
    %27 = vector.broadcast %4 : f32 to vector<8x128xf32>
    %28 = arith.mulf %27, %18 : vector<8x128xf32>
    %29 = arith.index_cast %c1_i32 : i32 to index
    %c0_14 = arith.constant 0 : index
    %c0_15 = arith.constant 0 : index
    %30 = vector.load %arg4[%29, %c0_14, %c0_15] : memref<8x8x128xf32, #tpu.memory_space<vmem>>, vector<1x8x128xf32>
    %31 = vector.shape_cast %30 : vector<1x8x128xf32> to vector<8x128xf32>
    %32 = arith.addf %26, %31 : vector<8x128xf32>
    %33 = vector.broadcast %3 : f32 to vector<8x128xf32>
    %34 = arith.mulf %33, %32 : vector<8x128xf32>
    %35 = arith.addf %28, %34 : vector<8x128xf32>
    %36 = arith.index_cast %c1_i32 : i32 to index
    %c0_16 = arith.constant 0 : index
    %c0_17 = arith.constant 0 : index
    %37 = vector.load %arg6[%36, %c0_16, %c0_17] : memref<8x8x128xf32, #tpu.memory_space<vmem>>, vector<1x8x128xf32>
    %38 = vector.shape_cast %37 : vector<1x8x128xf32> to vector<8x128xf32>
    %39 = vector.shape_cast %35 : vector<8x128xf32> to vector<1x8x128xf32>
    tpu.vector_store %arg6[%36, %c0_16, %c0_17], %39 {strides = array<i32>} : memref<8x8x128xf32, #tpu.memory_space<vmem>>, vector<1x8x128xf32>,
    %c2_i32 = arith.constant 2 : i32
    %40 = math.tanh %35 : vector<8x128xf32>
    %41 = arith.truncf %40 : vector<8x128xf32> to vector<8x128xbf16>
    %c0_18 = arith.constant 0 : index
    %c0_19 = arith.constant 0 : index
    %42 = vector.load %arg5[%c0_18, %c0_19] : memref<128x128xbf16, #tpu.memory_space<vmem>>, vector<128x128xbf16>
    %cst_20 = arith.constant dense<0.000000e+00> : vector<8x128xf32>
    %43 = tpu.matmul %41, %42, %cst_20 {dimension_numbers = #tpu.dot_dimension_numbers<[1], [0], [0], [1], [0, 0, 1, 1], [], []>} : vector<8x128xbf16>, vector<128x128xbf16>, vector<8x128xf32> -> vector<8x128xf32>
    %44 = vector.broadcast %4 : f32 to vector<8x128xf32>
    %45 = arith.mulf %44, %35 : vector<8x128xf32>
    %46 = arith.index_cast %c2_i32 : i32 to index
    %c0_21 = arith.constant 0 : index
    %c0_22 = arith.constant 0 : index
    %47 = vector.load %arg4[%46, %c0_21, %c0_22] : memref<8x8x128xf32, #tpu.memory_space<vmem>>, vector<1x8x128xf32>
    %48 = vector.shape_cast %47 : vector<1x8x128xf32> to vector<8x128xf32>
    %49 = arith.addf %43, %48 : vector<8x128xf32>
    %50 = vector.broadcast %3 : f32 to vector<8x128xf32>
    %51 = arith.mulf %50, %49 : vector<8x128xf32>
    %52 = arith.addf %45, %51 : vector<8x128xf32>
    %53 = arith.index_cast %c2_i32 : i32 to index
    %c0_23 = arith.constant 0 : index
    %c0_24 = arith.constant 0 : index
    %54 = vector.load %arg6[%53, %c0_23, %c0_24] : memref<8x8x128xf32, #tpu.memory_space<vmem>>, vector<1x8x128xf32>
    %55 = vector.shape_cast %54 : vector<1x8x128xf32> to vector<8x128xf32>
    %56 = vector.shape_cast %52 : vector<8x128xf32> to vector<1x8x128xf32>
    tpu.vector_store %arg6[%53, %c0_23, %c0_24], %56 {strides = array<i32>} : memref<8x8x128xf32, #tpu.memory_space<vmem>>, vector<1x8x128xf32>,
    %c3_i32 = arith.constant 3 : i32
    %57 = math.tanh %52 : vector<8x128xf32>
    %58 = arith.truncf %57 : vector<8x128xf32> to vector<8x128xbf16>
    %c0_25 = arith.constant 0 : index
    %c0_26 = arith.constant 0 : index
    %59 = vector.load %arg5[%c0_25, %c0_26] : memref<128x128xbf16, #tpu.memory_space<vmem>>, vector<128x128xbf16>
    %cst_27 = arith.constant dense<0.000000e+00> : vector<8x128xf32>
    %60 = tpu.matmul %58, %59, %cst_27 {dimension_numbers = #tpu.dot_dimension_numbers<[1], [0], [0], [1], [0, 0, 1, 1], [], []>} : vector<8x128xbf16>, vector<128x128xbf16>, vector<8x128xf32> -> vector<8x128xf32>
    %61 = vector.broadcast %4 : f32 to vector<8x128xf32>
    %62 = arith.mulf %61, %52 : vector<8x128xf32>
    %63 = arith.index_cast %c3_i32 : i32 to index
    %c0_28 = arith.constant 0 : index
    %c0_29 = arith.constant 0 : index
    %64 = vector.load %arg4[%63, %c0_28, %c0_29] : memref<8x8x128xf32, #tpu.memory_space<vmem>>, vector<1x8x128xf32>
    %65 = vector.shape_cast %64 : vector<1x8x128xf32> to vector<8x128xf32>
    %66 = arith.addf %60, %65 : vector<8x128xf32>
    %67 = vector.broadcast %3 : f32 to vector<8x128xf32>
    %68 = arith.mulf %67, %66 : vector<8x128xf32>
    %69 = arith.addf %62, %68 : vector<8x128xf32>
    %70 = arith.index_cast %c3_i32 : i32 to index
    %c0_30 = arith.constant 0 : index
    %c0_31 = arith.constant 0 : index
    %71 = vector.load %arg6[%70, %c0_30, %c0_31] : memref<8x8x128xf32, #tpu.memory_space<vmem>>, vector<1x8x128xf32>
    %72 = vector.shape_cast %71 : vector<1x8x128xf32> to vector<8x128xf32>
    %73 = vector.shape_cast %69 : vector<8x128xf32> to vector<1x8x128xf32>
    tpu.vector_store %arg6[%70, %c0_30, %c0_31], %73 {strides = array<i32>} : memref<8x8x128xf32, #tpu.memory_space<vmem>>, vector<1x8x128xf32>,
    %c4_i32 = arith.constant 4 : i32
    %74 = math.tanh %69 : vector<8x128xf32>
    %75 = arith.truncf %74 : vector<8x128xf32> to vector<8x128xbf16>
    %c0_32 = arith.constant 0 : index
    %c0_33 = arith.constant 0 : index
    %76 = vector.load %arg5[%c0_32, %c0_33] : memref<128x128xbf16, #tpu.memory_space<vmem>>, vector<128x128xbf16>
    %cst_34 = arith.constant dense<0.000000e+00> : vector<8x128xf32>
    %77 = tpu.matmul %75, %76, %cst_34 {dimension_numbers = #tpu.dot_dimension_numbers<[1], [0], [0], [1], [0, 0, 1, 1], [], []>} : vector<8x128xbf16>, vector<128x128xbf16>, vector<8x128xf32> -> vector<8x128xf32>
    %78 = vector.broadcast %4 : f32 to vector<8x128xf32>
    %79 = arith.mulf %78, %69 : vector<8x128xf32>
    %80 = arith.index_cast %c4_i32 : i32 to index
    %c0_35 = arith.constant 0 : index
    %c0_36 = arith.constant 0 : index
    %81 = vector.load %arg4[%80, %c0_35, %c0_36] : memref<8x8x128xf32, #tpu.memory_space<vmem>>, vector<1x8x128xf32>
    %82 = vector.shape_cast %81 : vector<1x8x128xf32> to vector<8x128xf32>
    %83 = arith.addf %77, %82 : vector<8x128xf32>
    %84 = vector.broadcast %3 : f32 to vector<8x128xf32>
    %85 = arith.mulf %84, %83 : vector<8x128xf32>
    %86 = arith.addf %79, %85 : vector<8x128xf32>
    %87 = arith.index_cast %c4_i32 : i32 to index
    %c0_37 = arith.constant 0 : index
    %c0_38 = arith.constant 0 : index
    %88 = vector.load %arg6[%87, %c0_37, %c0_38] : memref<8x8x128xf32, #tpu.memory_space<vmem>>, vector<1x8x128xf32>
    %89 = vector.shape_cast %88 : vector<1x8x128xf32> to vector<8x128xf32>
    %90 = vector.shape_cast %86 : vector<8x128xf32> to vector<1x8x128xf32>
    tpu.vector_store %arg6[%87, %c0_37, %c0_38], %90 {strides = array<i32>} : memref<8x8x128xf32, #tpu.memory_space<vmem>>, vector<1x8x128xf32>,
    %c5_i32 = arith.constant 5 : i32
    %91 = math.tanh %86 : vector<8x128xf32>
    %92 = arith.truncf %91 : vector<8x128xf32> to vector<8x128xbf16>
    %c0_39 = arith.constant 0 : index
    %c0_40 = arith.constant 0 : index
    %93 = vector.load %arg5[%c0_39, %c0_40] : memref<128x128xbf16, #tpu.memory_space<vmem>>, vector<128x128xbf16>
    %cst_41 = arith.constant dense<0.000000e+00> : vector<8x128xf32>
    %94 = tpu.matmul %92, %93, %cst_41 {dimension_numbers = #tpu.dot_dimension_numbers<[1], [0], [0], [1], [0, 0, 1, 1], [], []>} : vector<8x128xbf16>, vector<128x128xbf16>, vector<8x128xf32> -> vector<8x128xf32>
    %95 = vector.broadcast %4 : f32 to vector<8x128xf32>
    %96 = arith.mulf %95, %86 : vector<8x128xf32>
    %97 = arith.index_cast %c5_i32 : i32 to index
    %c0_42 = arith.constant 0 : index
    %c0_43 = arith.constant 0 : index
    %98 = vector.load %arg4[%97, %c0_42, %c0_43] : memref<8x8x128xf32, #tpu.memory_space<vmem>>, vector<1x8x128xf32>
    %99 = vector.shape_cast %98 : vector<1x8x128xf32> to vector<8x128xf32>
    %100 = arith.addf %94, %99 : vector<8x128xf32>
    %101 = vector.broadcast %3 : f32 to vector<8x128xf32>
    %102 = arith.mulf %101, %100 : vector<8x128xf32>
    %103 = arith.addf %96, %102 : vector<8x128xf32>
    %104 = arith.index_cast %c5_i32 : i32 to index
    %c0_44 = arith.constant 0 : index
    %c0_45 = arith.constant 0 : index
    %105 = vector.load %arg6[%104, %c0_44, %c0_45] : memref<8x8x128xf32, #tpu.memory_space<vmem>>, vector<1x8x128xf32>
    %106 = vector.shape_cast %105 : vector<1x8x128xf32> to vector<8x128xf32>
    %107 = vector.shape_cast %103 : vector<8x128xf32> to vector<1x8x128xf32>
    tpu.vector_store %arg6[%104, %c0_44, %c0_45], %107 {strides = array<i32>} : memref<8x8x128xf32, #tpu.memory_space<vmem>>, vector<1x8x128xf32>,
    %c6_i32 = arith.constant 6 : i32
    %108 = math.tanh %103 : vector<8x128xf32>
    %109 = arith.truncf %108 : vector<8x128xf32> to vector<8x128xbf16>
    %c0_46 = arith.constant 0 : index
    %c0_47 = arith.constant 0 : index
    %110 = vector.load %arg5[%c0_46, %c0_47] : memref<128x128xbf16, #tpu.memory_space<vmem>>, vector<128x128xbf16>
    %cst_48 = arith.constant dense<0.000000e+00> : vector<8x128xf32>
    %111 = tpu.matmul %109, %110, %cst_48 {dimension_numbers = #tpu.dot_dimension_numbers<[1], [0], [0], [1], [0, 0, 1, 1], [], []>} : vector<8x128xbf16>, vector<128x128xbf16>, vector<8x128xf32> -> vector<8x128xf32>
    %112 = vector.broadcast %4 : f32 to vector<8x128xf32>
    %113 = arith.mulf %112, %103 : vector<8x128xf32>
    %114 = arith.index_cast %c6_i32 : i32 to index
    %c0_49 = arith.constant 0 : index
    %c0_50 = arith.constant 0 : index
    %115 = vector.load %arg4[%114, %c0_49, %c0_50] : memref<8x8x128xf32, #tpu.memory_space<vmem>>, vector<1x8x128xf32>
    %116 = vector.shape_cast %115 : vector<1x8x128xf32> to vector<8x128xf32>
    %117 = arith.addf %111, %116 : vector<8x128xf32>
    %118 = vector.broadcast %3 : f32 to vector<8x128xf32>
    %119 = arith.mulf %118, %117 : vector<8x128xf32>
    %120 = arith.addf %113, %119 : vector<8x128xf32>
    %121 = arith.index_cast %c6_i32 : i32 to index
    %c0_51 = arith.constant 0 : index
    %c0_52 = arith.constant 0 : index
    %122 = vector.load %arg6[%121, %c0_51, %c0_52] : memref<8x8x128xf32, #tpu.memory_space<vmem>>, vector<1x8x128xf32>
    %123 = vector.shape_cast %122 : vector<1x8x128xf32> to vector<8x128xf32>
    %124 = vector.shape_cast %120 : vector<8x128xf32> to vector<1x8x128xf32>
    tpu.vector_store %arg6[%121, %c0_51, %c0_52], %124 {strides = array<i32>} : memref<8x8x128xf32, #tpu.memory_space<vmem>>, vector<1x8x128xf32>,
    %c7_i32 = arith.constant 7 : i32
    %125 = math.tanh %120 : vector<8x128xf32>
    %126 = arith.truncf %125 : vector<8x128xf32> to vector<8x128xbf16>
    %c0_53 = arith.constant 0 : index
    %c0_54 = arith.constant 0 : index
    %127 = vector.load %arg5[%c0_53, %c0_54] : memref<128x128xbf16, #tpu.memory_space<vmem>>, vector<128x128xbf16>
    %cst_55 = arith.constant dense<0.000000e+00> : vector<8x128xf32>
    %128 = tpu.matmul %126, %127, %cst_55 {dimension_numbers = #tpu.dot_dimension_numbers<[1], [0], [0], [1], [0, 0, 1, 1], [], []>} : vector<8x128xbf16>, vector<128x128xbf16>, vector<8x128xf32> -> vector<8x128xf32>
    %129 = vector.broadcast %4 : f32 to vector<8x128xf32>
    %130 = arith.mulf %129, %120 : vector<8x128xf32>
    %131 = arith.index_cast %c7_i32 : i32 to index
    %c0_56 = arith.constant 0 : index
    %c0_57 = arith.constant 0 : index
    %132 = vector.load %arg4[%131, %c0_56, %c0_57] : memref<8x8x128xf32, #tpu.memory_space<vmem>>, vector<1x8x128xf32>
    %133 = vector.shape_cast %132 : vector<1x8x128xf32> to vector<8x128xf32>
    %134 = arith.addf %128, %133 : vector<8x128xf32>
    %135 = vector.broadcast %3 : f32 to vector<8x128xf32>
    %136 = arith.mulf %135, %134 : vector<8x128xf32>
    %137 = arith.addf %130, %136 : vector<8x128xf32>
    %138 = arith.index_cast %c7_i32 : i32 to index
    %c0_58 = arith.constant 0 : index
    %c0_59 = arith.constant 0 : index
    %139 = vector.load %arg6[%138, %c0_58, %c0_59] : memref<8x8x128xf32, #tpu.memory_space<vmem>>, vector<1x8x128xf32>
    %140 = vector.shape_cast %139 : vector<1x8x128xf32> to vector<8x128xf32>
    %141 = vector.shape_cast %137 : vector<8x128xf32> to vector<1x8x128xf32>
    tpu.vector_store %arg6[%138, %c0_58, %c0_59], %141 {strides = array<i32>} : memref<8x8x128xf32, #tpu.memory_space<vmem>>, vector<1x8x128xf32>,
    %c8_i32 = arith.constant 8 : i32
    %c0_60 = arith.constant 0 : index
    %c0_61 = arith.constant 0 : index
    %142 = vector.load %arg7[%c0_60, %c0_61] : memref<8x128xf32, #tpu.memory_space<vmem>>, vector<8x128xf32>
    tpu.vector_store %arg7[%c0_60, %c0_61], %137 {strides = array<i32>} : memref<8x128xf32, #tpu.memory_space<vmem>>, vector<8x128xf32>,
    return
  }
  func.func @transform_0(%arg0: i32, %arg1: i32) -> i32 {
    %c0_i32 = arith.constant 0 : i32
    %c0_i32_0 = arith.constant 0 : i32
    return %c0_i32 : i32
  }
  func.func @transform_1(%arg0: i32, %arg1: i32) -> (i32, i32) {
    %c0_i32 = arith.constant 0 : i32
    %c0_i32_0 = arith.constant 0 : i32
    return %arg0, %c0_i32 : i32, i32
  }
  func.func @transform_2(%arg0: i32, %arg1: i32) -> (i32, i32, i32) {
    %c0_i32 = arith.constant 0 : i32
    %c0_i32_0 = arith.constant 0 : i32
    return %arg1, %arg0, %c0_i32 : i32, i32, i32
  }
  func.func @transform_3(%arg0: i32, %arg1: i32) -> (i32, i32) {
    %c0_i32 = arith.constant 0 : i32
    %c0_i32_0 = arith.constant 0 : i32
    %c0_i32_1 = arith.constant 0 : i32
    return %c0_i32, %c0_i32_0 : i32, i32
  }
  func.func @transform_4(%arg0: i32, %arg1: i32) -> (i32, i32, i32) {
    %c0_i32 = arith.constant 0 : i32
    %c0_i32_0 = arith.constant 0 : i32
    return %arg1, %arg0, %c0_i32 : i32, i32, i32
  }
}

</mosaic_0001>

<bundles_post_ra>
// kernel: tpu_custom_call.1
= control target key start
LH: loop header
LB: loop body
LE: loop exit
PB: predicated region body
PF: predicated region fallthrough
CT: control target
= control target key end

     0   :  { %s2396_s0 = inlined_call_operand.<no memory space> [shape: f32[1], index: 0, kind: input, shape index: {}]   ;;  %s2397_s1 = inlined_call_operand.hbm [shape: f32[8,128], index: 1, kind: input, shape index: {}]   ;;  %s2398_s2 = inlined_call_operand.hbm [shape: f32[16,8,128], index: 2, kind: input, shape index: {}]   ;;  %s2399_s3 = inlined_call_operand.hbm [shape: bf16[128,128], index: 3, kind: input, shape index: {}]   ;;  %s2400_s4 = inlined_call_operand.hbm [shape: f32[16,8,128], index: 4, kind: output, shape index: {}]  }
   0x1   :  { %9 = sst [smem:[#allocation3]] %s2396_s0 }
   0x2   :  { %10 = vsyncpa [#allocation5], 0 }
   0x3   :  { %11 = vsyncpa [#allocation8], 0 }
   0x4   :  { %13 = vsyncpa [#allocation8 + $0x1], 0 }
   0x5   :  { %14 = vsyncpa [#allocation6], 0 }
   0x6   :  { %16 = vsyncpa [#allocation6 + $0x1], 0  ;;  %s2029_s17 = smov 0   ;;  %s2031_s18 = smov 0  }
   0x7   :  { %s2033_s19 = smov 0   ;;  %s2035_s20 = smov 0  }
   0x8   :  { %s2037_s21 = smov 0   ;;  %s2039_s22 = smov 0  }
   0x9 LB: > { %s2060_s0 = sadd.s32 4294967295, %s1987_s22   ;;  %s1309_s23 = sadd.s32 4294967294, %s1987_s22   ;;  %s1987_s22 = sphi %s2039_s22, %s22_s22   ;;  %s1983_s21 = sphi %s2037_s21, %s2427_s21   ;;  %s1979_s20 = sphi %s2035_s20, %s2426_s20   ;;  %s1975_s19 = sphi %s2033_s19, %s2425_s19   ;;  %s1971_s18 = sphi %s2031_s18, %s2424_s18   ;;  %s1967_s17 = sphi %s2029_s17, %s2423_s17  }
   0xa   : > { %p97_p0 = scmp.ne.s32.totalorder %s1975_s19, %s1971_s18  ;;  %p98_p1 = scmp.eq.s32.totalorder %s1987_s22, 0 }
   0xb   : > { %p103_p2 = scmp.ne.s32.totalorder %s1971_s18, %s1967_s17  ;;  %p2401_p3 = scmp.eq.s32.totalorder %s2060_s0, 0 }
   0xc   : > { %p2069_p4 = por %p98_p1, %p97_p0  ;;  %p150_p5 = scmp.eq.s32.totalorder %s2060_s0, 1 }
   0xd   : > { %p2076_p6 = por %p2401_p3, %p103_p2  ;;  %p156_p7 = scmp.eq.s32.totalorder %s1309_s23, 1 }
   0xe   : > { %p2080_p8 = por %p150_p5, %p97_p0  ;;  %p1310_p9 = scmp.ge.s32.totalorder %s1987_s22, 1 }
   0xf   : > { %s2407_s25 = scalar_select %p2076_p6, 1, 0 }
  0x10   : > { %s2408_s26 = scalar_select %p2080_p8, 1, 0 }
  0x11   : > { %p2085_p10 = por %p156_p7, %p103_p2  ;;  %p163_p11 = scmp.lt.s32.totalorder %s1987_s22, 3 }
  0x12   : > { %s1989_s29 = smov [#allocation9]   ;;  %p1669_p1 = scmp.lt.s32.totalorder %s1987_s22, 2 }
  0x13   : > { %s2409_s27 = scalar_select %p2085_p10, 1, 0 }
  0x14   : > { %p2090_p12 = pnand %p1310_p9, %p163_p11  ;;  %s191_s30 = sshll.u32 %s1989_s29, 4  ;;  %s192_s30 = int_to_ptr.vmem [resolvable:$true] %s191_s30 }
  0x15   : > { %p2106_p2 = pnand %p1669_p1, %p2069_p4  ;;  %s1811_s9 = scalar_lea.hbm %s2399_s3, 1024 }
  0x16   : > { %s2410_s28 = scalar_select %p2090_p12, 1, 0 }
  0x17   : > { %p1652_p13 = pneg %p2090_p12  ;;  %p1812_p7 = scmp.ne.s32.totalorder %s2399_s3, %s1811_s9 }
  0x18   : > { %s2412_s6 = scalar_select %p2106_p2, 1, 0 }
  0x19   : > { %p2100_p5 = pnand %p1652_p13, %p2401_p3  ;;  %p1818_p4 = scmp.lt.u32.totalorder %s1811_s9, %s2399_s3 }
  0x1b   : > { %p1813_p9 = pneg %p2100_p5 }
  0x1d   : > { %p1814_p11 = pnand %p1813_p9, %p1812_p7 }
  0x1f   : > { %p1815_p13 = pneg %p1814_p11 }
  0x21   : > { %p1820_p1 = pnand %p1818_p4, %p1815_p13 }
  0x23   : > { %1823 = shalt.err (!%p1820_p1)
}
  0x24   : > { %s1824_s14 = scalar_lea.vmem %s192_s30, 1024  ;;  %p1832_p8 = scmp.lt.s32.totalorder %s192_s30, %s192_s30 }
  0x25   : > { %p1825_p0 = scmp.ne.s32.totalorder %s192_s30, %s1824_s14  ;;  %p1833_p6 = scmp.lt.s32.totalorder %s1824_s14, %s1824_s14 }
  0x27   : > { %p1827_p3 = pnand %p1825_p0, %p1813_p9  ;;  %p1834_p12 = por %p1833_p6, %p1832_p8 }
  0x29   : > { %p1828_p10 = pneg %p1827_p3 }
  0x2b   : > { %p1835_p2 = pnand %p1834_p12, %p1828_p10 }
  0x2d   : > { %1838 = shalt.err (!%p1835_p2)
}
  0x2e   : > { %s1990_s15 = smov 64   ;;  %s1991_s16 = smov 4  }
  0x2f   : > { %1658 = dma.hbm_to_vmem [thread:$0]  (!%p2100_p5), %s2399_s3, 1024, %s192_s30, [#allocation8], %s1990_s15, %s1990_s15, %s1991_s16  }
  0x30   : > { %s1992_s29 = smov [#allocation4]   ;;  %s1839_s10 = scalar_lea.hbm %s2397_s1, 128 }
  0x31   : > { %s181_s7 = sshll.u32 %s1992_s29, 4  ;;  %p1840_p3 = scmp.ne.s32.totalorder %s2397_s1, %s1839_s10  ;;  %s182_s7 = int_to_ptr.vmem [resolvable:$true] %s181_s7 }
  0x32   : > { %p1846_p10 = scmp.lt.u32.totalorder %s1839_s10, %s2397_s1 }
  0x33   : > { %p1842_p6 = pnand %p1840_p3, %p1813_p9 }
  0x35   : > { %p1843_p8 = pneg %p1842_p6 }
  0x37   : > { %p1848_p12 = pnand %p1846_p10, %p1843_p8 }
  0x39   : > { %1851 = shalt.err (!%p1848_p12)
}
  0x3a   : > { %s1852_s30 = scalar_lea.vmem %s182_s7, 128  ;;  %p1860_p11 = scmp.lt.s32.totalorder %s182_s7, %s182_s7 }
  0x3b   : > { %p1853_p0 = scmp.ne.s32.totalorder %s182_s7, %s1852_s30  ;;  %p1861_p13 = scmp.lt.s32.totalorder %s1852_s30, %s1852_s30 }
  0x3d   : > { %p1855_p2 = pnand %p1853_p0, %p1813_p9  ;;  %p1862_p4 = por %p1861_p13, %p1860_p11 }
  0x3f   : > { %p1856_p7 = pneg %p1855_p2 }
  0x41   : > { %p1863_p1 = pnand %p1862_p4, %p1856_p7 }
  0x43   : > { %1866 = shalt.err (!%p1863_p1)
}
  0x44   : > { %1655 = dma.hbm_to_vmem [thread:$0]  (!%p2100_p5), %s2397_s1, 128, %s182_s7, [#allocation5]  }
  0x45   : > { %s90_s23 = sadd.s32 1, %s1975_s19  ;;  %s31_s24 = sadd.s32 1, %s1983_s21 }
  0x46   : > { %s205_s29 = sand.u32 1, %s1987_s22   ;;  %p32_p9 = scmp.ge.s32.totalorder %s31_s24, 2 }
  0x47   : > { %s207_s8 = sand.u32 1, %s1975_s19   ;;  %s1406_s9 = sshll.u32 %s1983_s21, 10 }
  0x48   : > { %s2429_s24 = smov (%p32_p9, %s31_s24), 0  ;;  %s1314_s5 = sshll.u32 %s207_s8, 6 }
  0x49   : > { %s2162_s12 = scalar_lea.hbm %s2398_s2, %s1406_s9  ;;  %s85_s7 = ssub.s32 %s1983_s21, %s2429_s24 }
  0x4a   : > { %p88_p5 = scmp.eq.s32.totalorder %s85_s7, 0  ;;  %s209_s13 = scalar_lea.vmem [#allocation7], %s1314_s5 }
  0x4b   : > { %s217_s14 = sshll.u32 %s209_s13, 4  ;;  %s2171_s15 = scalar_lea.sflag [#allocation8], %s205_s29  ;;  %s2166_s14 = int_to_ptr.vmem [resolvable:$true] %s217_s14 }
  0x4c   : > { %s2169_s30 = scalar_select %p88_p5, %s1975_s19, %s90_s23  }
  0x4d   : > { %s1867_s16 = scalar_lea.hbm %s2162_s12, 1024  ;;  %p2413_p6 = scmp.ne.s32.totalorder %s2412_s6, 0 }
  0x4e   : > { %p1868_p3 = scmp.ne.s32.totalorder %s2162_s12, %s1867_s16  ;;  %s1872_s10 = scalar_lea.hbm %s2398_s2, 2048 }
  0x4f   : > { %p1869_p8 = pneg %p2413_p6  ;;  %p1873_p0 = scmp.lt.u32.totalorder %s2162_s12, %s2398_s2 }
  0x50   : > { %p1874_p2 = scmp.lt.u32.totalorder %s1872_s10, %s1867_s16  ;;  %p1876_p11 = scmp.lt.u32.totalorder %s1867_s16, %s2162_s12 }
  0x51   : > { %p1870_p10 = pnand %p1869_p8, %p1868_p3 }
  0x52   : > { %p1875_p7 = por %p1874_p2, %p1873_p0 }
  0x53   : > { %p1871_p12 = pneg %p1870_p10 }
  0x54   : > { %p1877_p13 = por %p1876_p11, %p1875_p7 }
  0x56   : > { %p1878_p4 = pnand %p1877_p13, %p1871_p12 }
  0x58   : > { %1881 = shalt.err (!%p1878_p4)
}
  0x59   : > { %s1882_s23 = scalar_lea.vmem %s2166_s14, 1024  ;;  %s1993_s29 = smov [#allocation7]  }
  0x5a   : > { %p1883_p1 = scmp.ne.s32.totalorder %s2166_s14, %s1882_s23  ;;  %s1887_s7 = sshll.u32 %s1993_s29, 4  ;;  %s1888_s7 = int_to_ptr.vmem [resolvable:$false] %s1887_s7 }
  0x5b   : > { %s1889_s13 = scalar_lea.vmem %s1888_s7, 2048  ;;  %p1890_p3 = scmp.lt.s32.totalorder %s2166_s14, %s1888_s7 }
  0x5c   : > { %p1885_p9 = pnand %p1883_p1, %p1869_p8  ;;  %p1891_p10 = scmp.lt.s32.totalorder %s1889_s13, %s1882_s23 }
  0x5e   : > { %p1886_p5 = pneg %p1885_p9  ;;  %p1892_p0 = por %p1891_p10, %p1890_p3 }
  0x60   : > { %p1893_p2 = pnand %p1892_p0, %p1886_p5 }
  0x62   : > { %1896 = shalt.err (!%p1893_p2)
}
  0x63   : > { %s1994_s16 = smov 128   ;;  %s1995_s8 = smov 8  }
  0x64   : > { %1662 = dma.hbm_to_vmem [thread:$0]  (!%p2413_p6), %s2162_s12, 1024, %s2166_s14, %s2171_s15, %s1994_s16, %s1994_s16, %s1995_s8  }
  0x65   : > { %p2414_p8 = scmp.ne.s32.totalorder %s2410_s28, 0 }
  0x66   : > { %p2415_p12 = scmp.eq.s32.totalorder (!%p2414_p8), %s2060_s0, 0 }
  0x67   : > { %229 = sbr.rel (%p2414_p8) target bundleno = 2011 (0x7db), region = 36 }
  0x6e   : > { %1950 = dma.done.wait (%p2415_p12), [#allocation5], 128   ;;  %p2416_p7 = pmov %p2415_p12 }
  0x6f   : > { %s235_s9 = sand.u32 1, %s2060_s0   ;;  %s237_s10 = sand.u32 1, %s1971_s18  }
  0x70   : > { %1952 = vsyncadd (%p2416_p7), [#allocation5], 4294967168  ;;  %s1319_s5 = sshll.u32 %s237_s10, 6  ;;  %s236_s11 = scalar_lea.sflag [#allocation8], %s235_s9 }
  0x71   : > { %s2209_s6 = scalar_lea.vmem [#allocation7], %s1319_s5  ;;  %p2417_p6 = scmp.ne.s32.totalorder %s2407_s25, 0 }
  0x73   : > { %1954 = dma.done.wait (%p2417_p6), %s236_s11, 1024  }
  0x74   : > { %1956 = vsyncadd (%p2417_p6), %s236_s11, 4294966272  ;;  %p2418_p11 = pmov %p2416_p7 }
  0x75   : > { %p2419_p13 = pmov %p2416_p7 }
  0x76   : > { %1958 = dma.done.wait (%p2418_p11), [#allocation8], 1024  }
  0x77   : > { %1960 = vsyncadd (%p2419_p13), [#allocation8], 4294966272  ;;  %s2219_s28 = scalar_lea.vmem [#allocation10], %s1319_s5  ;;  %p1322_p4 = scmp.ne.s32.totalorder %s1979_s20, 0 }
  0x78   : > { %v275_v0 = vld [vmem:[#allocation4] sm:$0xff] (!%p1322_p4) }
  0x79   : > { %274 = sbr.rel (%p1322_p4) target bundleno = 128 (0x80), region = 52  ;;  %276 = vst [vmem:[#allocation2] sm:$0xff] (!%p1322_p4), %v275_v0 }
  0x80 PF: > { %v1731_v1 = vld [vmem:[#allocation9] sm:$0xff]   ;;  %v1996_v2 = vmov 0.0   ;;  %v1732_v3 = vld [vmem:[#allocation9 + $0x8] sm:$0xff]   ;;  %vm1997_vm0 = vmmov 0   ;;  %v1733_v4 = vld [vmem:[#allocation9 + $0x10] sm:$0xff]   ;;  %s277_s0 = sld [smem:[#allocation3]] }
  0x81   : > { %1480 = vmatprep.subr.bf16.mxu0 %v1996_v2  ;;  %1500 = vmatprep.subr.bf16.mxu1 %v1996_v2  ;;  %v1739_v5 = vld [vmem:[#allocation9] sm:$0xff]   ;;  %v1734_v6 = vld [vmem:[#allocation9 + $0x18] sm:$0xff]   ;;  %v279_v7 = vld [vmem:[#allocation2] sm:$0xff]  ;;  %s1407_s12 = sshll.u32 %s1979_s20, 10  ;;  %s1200_s14 = sshll.u32 %s2219_s28, 4  ;;  %s2344_s14 = int_to_ptr.vmem [resolvable:$true] %s1200_s14 }
  0x82   : > { %1481 = vmatpush3.bf16.msra.mxu0 %v1731_v1  ;;  %1496 = vmatprep.mubr.msk.bf16.mxu0 %vm1997_vm0, %v1996_v2  ;;  %v1740_v8 = vld [vmem:[#allocation9 + $0x8] sm:$0xff]   ;;  %v1735_v9 = vld [vmem:[#allocation9 + $0x20] sm:$0xff]   ;;  %v1741_v10 = vld [vmem:[#allocation9 + $0x10] sm:$0xff]   ;;  %1795 = vtanh.f32 %v279_v7  ;;  %s2342_s29 = scalar_lea.hbm %s2400_s4, %s1407_s12  ;;  %s2349_s20 = scalar_lea.sflag [#allocation6], %s237_s10 }
  0x83   : > { %1482 = vmatprep.subr.bf16.mxu0 %v1996_v2  ;;  %1516 = vmatprep.mubr.msk.bf16.mxu1 %vm1997_vm0, %v1996_v2  ;;  %v1736_v11 = vld [vmem:[#allocation9 + $0x28] sm:$0xff]   ;;  %v1737_v12 = vld [vmem:[#allocation9 + $0x30] sm:$0xff]   ;;  %v1738_v13 = vld [vmem:[#allocation9 + $0x38] sm:$0xff]   ;;  %s1897_s7 = scalar_lea.vmem %s2344_s14, 1024  ;;  %p2420_p9 = scmp.ne.s32.totalorder %s2408_s26, 0 }
  0x84   : > { %1501 = vmatpush3.bf16.msra.mxu1 %v1739_v5  ;;  %v1742_v16 = vld [vmem:[#allocation9 + $0x18] sm:$0xff]   ;;  %v1743_v17 = vld [vmem:[#allocation9 + $0x20] sm:$0xff]   ;;  %v1744_v18 = vld [vmem:[#allocation9 + $0x28] sm:$0xff]   ;;  %p1898_p1 = scmp.ne.s32.totalorder %s2344_s14, %s1897_s7  ;;  %s1998_s13 = smov [#allocation10]  }
  0x85   : > { %1502 = vmatprep.subr.bf16.mxu1 %v1996_v2  ;;  %v1745_v19 = vld [vmem:[#allocation9 + $0x30] sm:$0xff]   ;;  %v1746_v20 = vld [vmem:[#allocation9 + $0x38] sm:$0xff]   ;;  %v1747_v21 = vld [vmem:[#allocation9] sm:$0xff]   ;;  %s1901_s16 = sshll.u32 %s1998_s13, 4  ;;  %s1902_s16 = int_to_ptr.vmem [resolvable:$false] %s1901_s16 }
  0x86   : > { %1483 = vmatpush3.bf16.msra.mxu0 %v1732_v3  ;;  %v1748_v22 = vld [vmem:[#allocation9 + $0x8] sm:$0xff]   ;;  %v1749_v23 = vld [vmem:[#allocation9 + $0x10] sm:$0xff]   ;;  %s278_s25 = ssub.f32 1.0, %s277_s0  ;;  %v300_v25 = vld [vmem:[%s2209_s6] sm:$0xff]  ;;  %v2252_v27 = vstv %s277_s0  ;;  %p1899_p5 = pnand %p1898_p1, %p2420_p9 }
  0x87   : > { %1484 = vmatprep.subr.bf16.mxu0 %v1996_v2  ;;  %v1750_v37 = vld [vmem:[#allocation9 + $0x18] sm:$0xff]   ;;  %v1751_v38 = vld [vmem:[#allocation9 + $0x20] sm:$0xff]   ;;  %v1752_v39 = vld [vmem:[#allocation9 + $0x28] sm:$0xff]   ;;  %s1903_s8 = scalar_lea.vmem %s1902_s16, 2048  ;;  %p1904_p10 = scmp.lt.s32.totalorder %s2344_s14, %s1902_s16 }
  0x88   : > { %1503 = vmatpush3.bf16.msra.mxu1 %v1740_v8  ;;  %v2249_v24 = vstv %s278_s25  ;;  %v1753_v40 = vld [vmem:[#allocation9 + $0x30] sm:$0xff]   ;;  %v1754_v41 = vld [vmem:[#allocation9 + $0x38] sm:$0xff]   ;;  %v1755_v42 = vld [vmem:[#allocation9] sm:$0xff]   ;;  %p1900_p3 = pneg %p1899_p5  ;;  %p1905_p0 = scmp.lt.s32.totalorder %s1903_s8, %s1897_s7 }
  0x89   : > { %1504 = vmatprep.subr.bf16.mxu1 %v1996_v2  ;;  %v299_v28 = vmul.f32 %v2249_v24, %v279_v7  ;;  %v1756_v43 = vld [vmem:[#allocation9 + $0x8] sm:$0xff]   ;;  %v1757_v44 = vld [vmem:[#allocation9 + $0x10] sm:$0xff]   ;;  %v1758_v56 = vld [vmem:[#allocation9 + $0x18] sm:$0xff]  }
  0x8a   : > { %1485 = vmatpush3.bf16.msra.mxu0 %v1733_v4  ;;  %v1331_v45 = vld [vmem:[%s2209_s6 + $0x8] sm:$0xff]  ;;  %v1759_v57 = vld [vmem:[#allocation9 + $0x20] sm:$0xff]   ;;  %v1761_v59 = vld [vmem:[#allocation9 + $0x30] sm:$0xff]   ;;  %p1906_p2 = por %p1905_p0, %p1904_p10 }
  0x8b   : > { %1486 = vmatprep.subr.bf16.mxu0 %v1996_v2  ;;  %v1760_v58 = vld [vmem:[#allocation9 + $0x28] sm:$0xff]   ;;  %v1762_v60 = vld [vmem:[#allocation9 + $0x38] sm:$0xff]   ;;  %v1763_v61 = vld [vmem:[#allocation9] sm:$0xff]  }
  0x8c   : > { %1505 = vmatpush3.bf16.msra.mxu1 %v1741_v10  ;;  %v1796_v14 = vpop.eup %1795  ;;  %v1764_v62 = vld [vmem:[#allocation9 + $0x8] sm:$0xff]   ;;  %v1765_v63 = vld [vmem:[#allocation9 + $0x10] sm:$0xff]   ;;  %p1907_p8 = pnand %p1906_p2, %p1900_p3 }
  0x8d   : > { %1506 = vmatprep.subr.bf16.mxu1 %v1996_v2  ;;  %v281_v15 = vpack.c.bf16 %v1796_v14, %v1796_v14  ;;  %v1341_v0 = vld [vmem:[%s2209_s6 + $0x10] sm:$0xff]  ;;  %v1768_v14 = vld [vmem:[#allocation9 + $0x28] sm:$0xff]  }
  0x8e   : > { %1487 = vmatpush3.bf16.msra.mxu0 %v1734_v6 }
  0x8f   : > { %1488 = vmatprep.subr.bf16.mxu0 %v1996_v2 }
  0x90   : > { %1507 = vmatpush3.bf16.msra.mxu1 %v1742_v16  ;;  %v1770_v16 = vld [vmem:[#allocation9 + $0x38] sm:$0xff]  }
  0x91   : > { %1508 = vmatprep.subr.bf16.mxu1 %v1996_v2 }
  0x92   : > { %1489 = vmatpush3.bf16.msra.mxu0 %v1735_v9 }
  0x93   : > { %1490 = vmatprep.subr.bf16.mxu0 %v1996_v2 }
  0x94   : > { %1509 = vmatpush3.bf16.msra.mxu1 %v1743_v17  ;;  %v1771_v17 = vld [vmem:[#allocation9] sm:$0xff]  }
  0x95   : > { %1510 = vmatprep.subr.bf16.mxu1 %v1996_v2 }
  0x96   : > { %1491 = vmatpush3.bf16.msra.mxu0 %v1736_v11 }
  0x97   : > { %1492 = vmatprep.subr.bf16.mxu0 %v1996_v2 }
  0x98   : > { %1511 = vmatpush3.bf16.msra.mxu1 %v1744_v18  ;;  %v1772_v18 = vld [vmem:[#allocation9 + $0x8] sm:$0xff]  }
  0x99   : > { %1512 = vmatprep.subr.bf16.mxu1 %v1996_v2 }
  0x9a   : > { %1493 = vmatpush3.bf16.msra.mxu0 %v1737_v12  ;;  %v1766_v12 = vld [vmem:[#allocation9 + $0x18] sm:$0xff]  }
  0x9b   : > { %1494 = vmatprep.subr.bf16.mxu0 %v1996_v2 }
  0x9c   : > { %1513 = vmatpush3.bf16.msra.mxu1 %v1745_v19  ;;  %v1773_v19 = vld [vmem:[#allocation9 + $0x10] sm:$0xff]  }
  0x9d   : > { %1514 = vmatprep.subr.bf16.mxu1 %v1996_v2 }
  0x9e   : > { %1495 = vmatpush3.bf16.msra.mxu0 %v1738_v13  ;;  %v1767_v13 = vld [vmem:[#allocation9 + $0x20] sm:$0xff]  }
  0x9f   : > { %1520 = vmatprep.subr.bf16.mxu0 %v1996_v2 }
  0xa0   : > { %1515 = vmatpush3.bf16.msra.mxu1 %v1746_v20  ;;  %v1351_v20 = vld [vmem:[%s2209_s6 + $0x18] sm:$0xff] }
  0xa1   : > { %1497 = vmatmul.mubr.bf16.vlgmr.msra.gmra.mrb[0].mxu0 %v281_v15  ;;  %1540 = vmatprep.subr.bf16.mxu1 %v1996_v2  ;;  %v1769_v15 = vld [vmem:[#allocation9 + $0x30] sm:$0xff]  }
  0xa2   : > { %1536 = vmatprep.mubr.msk.bf16.mxu0 %vm1997_vm0, %v1996_v2  ;;  %1521 = vmatpush3.bf16.msra.mxu0 %v1747_v21 }
  0xa3   : > { %1522 = vmatprep.subr.bf16.mxu0 %v1996_v2 }
  0xa6   : > { %1523 = vmatpush3.bf16.msra.mxu0 %v1748_v22 }
  0xa7   : > { %1524 = vmatprep.subr.bf16.mxu0 %v1996_v2 }
  0xaa   : > { %1525 = vmatpush3.bf16.msra.mxu0 %v1749_v23 }
  0xab   : > { %1526 = vmatprep.subr.bf16.mxu0 %v1996_v2 }
  0xae   : > { %1527 = vmatpush3.bf16.msra.mxu0 %v1750_v37  ;;  %v1778_v37 = vld [vmem:[#allocation9 + $0x38] sm:$0xff]  }
  0xaf   : > { %1528 = vmatprep.subr.bf16.mxu0 %v1996_v2 }
  0xb2   : > { %1529 = vmatpush3.bf16.msra.mxu0 %v1751_v38  ;;  %v1779_v38 = vld [vmem:[#allocation9] sm:$0xff]  }
  0xb3   : > { %1530 = vmatprep.subr.bf16.mxu0 %v1996_v2 }
  0xb6   : > { %1531 = vmatpush3.bf16.msra.mxu0 %v1752_v39  ;;  %v1780_v39 = vld [vmem:[#allocation9 + $0x8] sm:$0xff]  }
  0xb7   : > { %1532 = vmatprep.subr.bf16.mxu0 %v1996_v2 }
  0xba   : > { %1533 = vmatpush3.bf16.msra.mxu0 %v1753_v40  ;;  %v1781_v40 = vld [vmem:[#allocation9 + $0x10] sm:$0xff]  }
  0xbb   : > { %1534 = vmatprep.subr.bf16.mxu0 %v1996_v2 }
  0xbe   : > { %1535 = vmatpush3.bf16.msra.mxu0 %v1754_v41  ;;  %v1361_v41 = vld [vmem:[%s2209_s6 + $0x20] sm:$0xff] }
  0xbf   : > { %1560 = vmatprep.subr.bf16.mxu0 %v1996_v2 }
 0x174   : > { %v383_v26 = vpop.f32.mrb[0].mxu0 }
 0x175   : > { %v384_v29 = vadd.f32 %v383_v26, %v300_v25  ;;  %v1498_v30 = vpop.f32.mrb[1].mxu0 }
 0x176   : > { %v386_v31 = vpop.f32.mrb[2].mxu0 }
 0x177   : > { %v390_v32 = vmul.f32 %v2252_v27, %v384_v29  ;;  %v1499_v33 = vpop.f32.mrb[3].mxu0 }
 0x178   : > { %v1774_v33 = vld [vmem:[#allocation9 + $0x18] sm:$0xff]  }
 0x179   : > { %v391_v34 = vadd.f32 %v390_v32, %v299_v28 }
 0x17b   : > { %392 = vst [vmem:[%s2219_s28] sm:$0xff] %v391_v34  ;;  %1797 = vtanh.f32 %v391_v34  ;;  %v411_v50 = vmul.f32 %v391_v34, %v2249_v24  ;;  %v1775_v34 = vld [vmem:[#allocation9 + $0x20] sm:$0xff]  }
 0x185   : > { %v1798_v35 = vpop.eup %1797 }
 0x186   : > { %v394_v36 = vpack.c.bf16 %v1798_v35, %v1798_v35  ;;  %v1776_v35 = vld [vmem:[#allocation9 + $0x28] sm:$0xff]  }
 0x188   : > { %1517 = vmatmul.mubr.bf16.vlgmr.msra.gmra.mrb[0].mxu1 %v394_v36  ;;  %v1777_v36 = vld [vmem:[#allocation9 + $0x30] sm:$0xff]  }
 0x189   : > { %1556 = vmatprep.mubr.msk.bf16.mxu1 %vm1997_vm0, %v1996_v2  ;;  %1541 = vmatpush3.bf16.msra.mxu1 %v1755_v42 }
 0x18a   : > { %1542 = vmatprep.subr.bf16.mxu1 %v1996_v2 }
 0x18d   : > { %1543 = vmatpush3.bf16.msra.mxu1 %v1756_v43 }
 0x18e   : > { %1544 = vmatprep.subr.bf16.mxu1 %v1996_v2 }
 0x191   : > { %1545 = vmatpush3.bf16.msra.mxu1 %v1757_v44 }
 0x192   : > { %1546 = vmatprep.subr.bf16.mxu1 %v1996_v2 }
 0x195   : > { %1547 = vmatpush3.bf16.msra.mxu1 %v1758_v56  ;;  %v1786_v56 = vld [vmem:[#allocation9 + $0x38] sm:$0xff]  }
 0x196   : > { %1548 = vmatprep.subr.bf16.mxu1 %v1996_v2 }
 0x199   : > { %1549 = vmatpush3.bf16.msra.mxu1 %v1759_v57  ;;  %v1787_v57 = vld [vmem:[#allocation9] sm:$0xff]  }
 0x19a   : > { %1550 = vmatprep.subr.bf16.mxu1 %v1996_v2 }
 0x19d   : > { %1551 = vmatpush3.bf16.msra.mxu1 %v1760_v58  ;;  %v1788_v58 = vld [vmem:[#allocation9 + $0x8] sm:$0xff]  }
 0x19e   : > { %1552 = vmatprep.subr.bf16.mxu1 %v1996_v2 }
 0x1a1   : > { %1553 = vmatpush3.bf16.msra.mxu1 %v1761_v59  ;;  %v1789_v59 = vld [vmem:[#allocation9 + $0x10] sm:$0xff]  }
 0x1a2   : > { %1554 = vmatprep.subr.bf16.mxu1 %v1996_v2 }
 0x1a5   : > { %1555 = vmatpush3.bf16.msra.mxu1 %v1762_v60  ;;  %v1371_v60 = vld [vmem:[%s2209_s6 + $0x28] sm:$0xff] }
 0x1a6   : > { %1580 = vmatprep.subr.bf16.mxu1 %v1996_v2 }
 0x25b   : > { %v496_v46 = vpop.f32.mrb[0].mxu1 }
 0x25c   : > { %v497_v47 = vadd.f32 %v1331_v45, %v496_v46  ;;  %v1518_v48 = vpop.f32.mrb[1].mxu1 }
 0x25d   : > { %v499_v49 = vpop.f32.mrb[2].mxu1 }
 0x25e   : > { %v502_v51 = vmul.f32 %v497_v47, %v2252_v27  ;;  %v1519_v52 = vpop.f32.mrb[3].mxu1 }
 0x25f   : > { %v1782_v52 = vld [vmem:[#allocation9 + $0x18] sm:$0xff]  }
 0x260   : > { %v503_v53 = vadd.f32 %v502_v51, %v411_v50 }
 0x262   : > { %1340 = vst [vmem:[%s2219_s28 + $0x8] sm:$0xff] %v503_v53  ;;  %1799 = vtanh.f32 %v503_v53  ;;  %v524_v6 = vmul.f32 %v503_v53, %v2249_v24  ;;  %v1783_v53 = vld [vmem:[#allocation9 + $0x20] sm:$0xff]  }
 0x26c   : > { %v1800_v54 = vpop.eup %1799 }
 0x26d   : > { %v507_v55 = vpack.c.bf16 %v1800_v54, %v1800_v54  ;;  %v1784_v54 = vld [vmem:[#allocation9 + $0x28] sm:$0xff]  }
 0x26f   : > { %1537 = vmatmul.mubr.bf16.vlgmr.msra.gmra.mrb[4].mxu0 %v507_v55  ;;  %v1785_v55 = vld [vmem:[#allocation9 + $0x30] sm:$0xff]  }
 0x270   : > { %1576 = vmatprep.mubr.msk.bf16.mxu0 %vm1997_vm0, %v1996_v2  ;;  %1561 = vmatpush3.bf16.msra.mxu0 %v1763_v61 }
 0x271   : > { %1562 = vmatprep.subr.bf16.mxu0 %v1996_v2 }
 0x274   : > { %1563 = vmatpush3.bf16.msra.mxu0 %v1764_v62 }
 0x275   : > { %1564 = vmatprep.subr.bf16.mxu0 %v1996_v2 }
 0x278   : > { %1565 = vmatpush3.bf16.msra.mxu0 %v1765_v63 }
 0x279   : > { %1566 = vmatprep.subr.bf16.mxu0 %v1996_v2 }
 0x27c   : > { %1567 = vmatpush3.bf16.msra.mxu0 %v1766_v12  ;;  %v1794_v12 = vld [vmem:[#allocation9 + $0x38] sm:$0xff]  }
 0x27d   : > { %1568 = vmatprep.subr.bf16.mxu0 %v1996_v2 }
 0x280   : > { %1569 = vmatpush3.bf16.msra.mxu0 %v1767_v13  ;;  %v1381_v13 = vld [vmem:[%s2209_s6 + $0x30] sm:$0xff] }
 0x281   : > { %1570 = vmatprep.subr.bf16.mxu0 %v1996_v2 }
 0x284   : > { %1571 = vmatpush3.bf16.msra.mxu0 %v1768_v14 }
 0x285   : > { %1572 = vmatprep.subr.bf16.mxu0 %v1996_v2 }
 0x288   : > { %1573 = vmatpush3.bf16.msra.mxu0 %v1769_v15 }
 0x289   : > { %1574 = vmatprep.subr.bf16.mxu0 %v1996_v2 }
 0x28c   : > { %1575 = vmatpush3.bf16.msra.mxu0 %v1770_v16 }
 0x28d   : > { %1600 = vmatprep.subr.bf16.mxu0 %v1996_v2 }
 0x342   : > { %v609_v1 = vpop.f32.mrb[4].mxu0 }
 0x343   : > { %v610_v3 = vadd.f32 %v1341_v0, %v609_v1  ;;  %v1538_v4 = vpop.f32.mrb[5].mxu0 }
 0x344   : > { %v612_v5 = vpop.f32.mrb[6].mxu0 }
 0x345   : > { %v615_v7 = vmul.f32 %v610_v3, %v2252_v27  ;;  %v1539_v8 = vpop.f32.mrb[7].mxu0 }
 0x346   : > { %v1790_v8 = vld [vmem:[#allocation9 + $0x18] sm:$0xff]  }
 0x347   : > { %v616_v9 = vadd.f32 %v615_v7, %v524_v6 }
 0x349   : > { %1350 = vst [vmem:[%s2219_s28 + $0x10] sm:$0xff] %v616_v9  ;;  %1801 = vtanh.f32 %v616_v9  ;;  %v637_v26 = vmul.f32 %v616_v9, %v2249_v24  ;;  %v1791_v9 = vld [vmem:[#allocation9 + $0x20] sm:$0xff]  }
 0x353   : > { %v1802_v10 = vpop.eup %1801 }
 0x354   : > { %v620_v11 = vpack.c.bf16 %v1802_v10, %v1802_v10  ;;  %v1792_v10 = vld [vmem:[#allocation9 + $0x28] sm:$0xff]  }
 0x356   : > { %1557 = vmatmul.mubr.bf16.vlgmr.msra.gmra.mrb[4].mxu1 %v620_v11  ;;  %v1793_v11 = vld [vmem:[#allocation9 + $0x30] sm:$0xff]  }
 0x357   : > { %1596 = vmatprep.mubr.msk.bf16.mxu1 %vm1997_vm0, %v1996_v2  ;;  %1581 = vmatpush3.bf16.msra.mxu1 %v1771_v17 }
 0x358   : > { %1582 = vmatprep.subr.bf16.mxu1 %v1996_v2 }
 0x35b   : > { %1583 = vmatpush3.bf16.msra.mxu1 %v1772_v18 }
 0x35c   : > { %1584 = vmatprep.subr.bf16.mxu1 %v1996_v2 }
 0x35f   : > { %1585 = vmatpush3.bf16.msra.mxu1 %v1773_v19 }
 0x360   : > { %1586 = vmatprep.subr.bf16.mxu1 %v1996_v2 }
 0x363   : > { %1587 = vmatpush3.bf16.msra.mxu1 %v1774_v33 }
 0x364   : > { %1588 = vmatprep.subr.bf16.mxu1 %v1996_v2 }
 0x367   : > { %1589 = vmatpush3.bf16.msra.mxu1 %v1775_v34 }
 0x368   : > { %1590 = vmatprep.subr.bf16.mxu1 %v1996_v2 }
 0x36b   : > { %1591 = vmatpush3.bf16.msra.mxu1 %v1776_v35 }
 0x36c   : > { %1592 = vmatprep.subr.bf16.mxu1 %v1996_v2 }
 0x36f   : > { %1593 = vmatpush3.bf16.msra.mxu1 %v1777_v36 }
 0x370   : > { %1594 = vmatprep.subr.bf16.mxu1 %v1996_v2 }
 0x373   : > { %1595 = vmatpush3.bf16.msra.mxu1 %v1778_v37 }
 0x374   : > { %1620 = vmatprep.subr.bf16.mxu1 %v1996_v2 }
 0x429   : > { %v722_v21 = vpop.f32.mrb[4].mxu1 }
 0x42a   : > { %v723_v22 = vadd.f32 %v1351_v20, %v722_v21  ;;  %v1558_v23 = vpop.f32.mrb[5].mxu1 }
 0x42b   : > { %v725_v25 = vpop.f32.mrb[6].mxu1  ;;  %v1391_v23 = vld [vmem:[%s2209_s6 + $0x38] sm:$0xff] }
 0x42c   : > { %v728_v28 = vmul.f32 %v723_v22, %v2252_v27  ;;  %v1559_v29 = vpop.f32.mrb[7].mxu1 }
 0x42e   : > { %v729_v30 = vadd.f32 %v728_v28, %v637_v26 }
 0x430   : > { %1360 = vst [vmem:[%s2219_s28 + $0x18] sm:$0xff] %v729_v30  ;;  %1803 = vtanh.f32 %v729_v30  ;;  %v750_v46 = vmul.f32 %v729_v30, %v2249_v24 }
 0x43a   : > { %v1804_v31 = vpop.eup %1803 }
 0x43b   : > { %v733_v32 = vpack.c.bf16 %v1804_v31, %v1804_v31 }
 0x43d   : > { %1577 = vmatmul.mubr.bf16.vlgmr.msra.gmra.mrb[8].mxu0 %v733_v32 }
 0x43e   : > { %1616 = vmatprep.mubr.msk.bf16.mxu0 %vm1997_vm0, %v1996_v2  ;;  %1601 = vmatpush3.bf16.msra.mxu0 %v1779_v38 }
 0x43f   : > { %1602 = vmatprep.subr.bf16.mxu0 %v1996_v2 }
 0x442   : > { %1603 = vmatpush3.bf16.msra.mxu0 %v1780_v39 }
 0x443   : > { %1604 = vmatprep.subr.bf16.mxu0 %v1996_v2 }
 0x446   : > { %1605 = vmatpush3.bf16.msra.mxu0 %v1781_v40 }
 0x447   : > { %1606 = vmatprep.subr.bf16.mxu0 %v1996_v2 }
 0x44a   : > { %1607 = vmatpush3.bf16.msra.mxu0 %v1782_v52 }
 0x44b   : > { %1608 = vmatprep.subr.bf16.mxu0 %v1996_v2 }
 0x44e   : > { %1609 = vmatpush3.bf16.msra.mxu0 %v1783_v53 }
 0x44f   : > { %1610 = vmatprep.subr.bf16.mxu0 %v1996_v2 }
 0x452   : > { %1611 = vmatpush3.bf16.msra.mxu0 %v1784_v54 }
 0x453   : > { %1612 = vmatprep.subr.bf16.mxu0 %v1996_v2 }
 0x456   : > { %1613 = vmatpush3.bf16.msra.mxu0 %v1785_v55 }
 0x457   : > { %1614 = vmatprep.subr.bf16.mxu0 %v1996_v2 }
 0x45a   : > { %1615 = vmatpush3.bf16.msra.mxu0 %v1786_v56 }
 0x510   : > { %v835_v42 = vpop.f32.mrb[8].mxu0 }
 0x511   : > { %v836_v43 = vadd.f32 %v1361_v41, %v835_v42  ;;  %v1578_v44 = vpop.f32.mrb[9].mxu0 }
 0x512   : > { %v838_v45 = vpop.f32.mrb[10].mxu0 }
 0x513   : > { %v841_v47 = vmul.f32 %v836_v43, %v2252_v27  ;;  %v1579_v48 = vpop.f32.mrb[11].mxu0 }
 0x515   : > { %v842_v49 = vadd.f32 %v841_v47, %v750_v46 }
 0x517   : > { %1370 = vst [vmem:[%s2219_s28 + $0x20] sm:$0xff] %v842_v49  ;;  %1805 = vtanh.f32 %v842_v49  ;;  %v863_v1 = vmul.f32 %v842_v49, %v2249_v24 }
 0x521   : > { %v1806_v50 = vpop.eup %1805 }
 0x522   : > { %v846_v51 = vpack.c.bf16 %v1806_v50, %v1806_v50 }
 0x524   : > { %1597 = vmatmul.mubr.bf16.vlgmr.msra.gmra.mrb[8].mxu1 %v846_v51 }
 0x525   : > { %1636 = vmatprep.mubr.msk.bf16.mxu1 %vm1997_vm0, %v1996_v2  ;;  %1621 = vmatpush3.bf16.msra.mxu1 %v1787_v57 }
 0x526   : > { %1622 = vmatprep.subr.bf16.mxu1 %v1996_v2 }
 0x529   : > { %1623 = vmatpush3.bf16.msra.mxu1 %v1788_v58 }
 0x52a   : > { %1624 = vmatprep.subr.bf16.mxu1 %v1996_v2 }
 0x52d   : > { %1625 = vmatpush3.bf16.msra.mxu1 %v1789_v59 }
 0x52e   : > { %1626 = vmatprep.subr.bf16.mxu1 %v1996_v2 }
 0x531   : > { %1627 = vmatpush3.bf16.msra.mxu1 %v1790_v8 }
 0x532   : > { %1628 = vmatprep.subr.bf16.mxu1 %v1996_v2 }
 0x535   : > { %1629 = vmatpush3.bf16.msra.mxu1 %v1791_v9 }
 0x536   : > { %1630 = vmatprep.subr.bf16.mxu1 %v1996_v2 }
 0x539   : > { %1631 = vmatpush3.bf16.msra.mxu1 %v1792_v10 }
 0x53a   : > { %1632 = vmatprep.subr.bf16.mxu1 %v1996_v2 }
 0x53d   : > { %1633 = vmatpush3.bf16.msra.mxu1 %v1793_v11 }
 0x53e   : > { %1634 = vmatprep.subr.bf16.mxu1 %v1996_v2 }
 0x541   : > { %1635 = vmatpush3.bf16.msra.mxu1 %v1794_v12 }
 0x5f7   : > { %v948_v61 = vpop.f32.mrb[8].mxu1 }
 0x5f8   : > { %v949_v62 = vadd.f32 %v1371_v60, %v948_v61  ;;  %v1598_v63 = vpop.f32.mrb[9].mxu1 }
 0x5f9   : > { %v951_v0 = vpop.f32.mrb[10].mxu1 }
 0x5fa   : > { %v954_v3 = vmul.f32 %v949_v62, %v2252_v27  ;;  %v1599_v4 = vpop.f32.mrb[11].mxu1 }
 0x5fc   : > { %v955_v5 = vadd.f32 %v954_v3, %v863_v1 }
 0x5fe   : > { %1380 = vst [vmem:[%s2219_s28 + $0x28] sm:$0xff] %v955_v5  ;;  %1807 = vtanh.f32 %v955_v5  ;;  %v976_v18 = vmul.f32 %v955_v5, %v2249_v24 }
 0x608   : > { %v1808_v6 = vpop.eup %1807 }
 0x609   : > { %v959_v7 = vpack.c.bf16 %v1808_v6, %v1808_v6 }
 0x60b   : > { %1617 = vmatmul.mubr.bf16.vlgmr.msra.gmra.mrb[12].mxu0 %v959_v7 }
 0x6de   : > { %v1061_v14 = vpop.f32.mrb[12].mxu0 }
 0x6df   : > { %v1062_v15 = vadd.f32 %v1381_v13, %v1061_v14  ;;  %v1618_v16 = vpop.f32.mrb[13].mxu0 }
 0x6e0   : > { %v1064_v17 = vpop.f32.mrb[14].mxu0 }
 0x6e1   : > { %v1067_v19 = vmul.f32 %v1062_v15, %v2252_v27  ;;  %v1619_v20 = vpop.f32.mrb[15].mxu0 }
 0x6e3   : > { %v1068_v21 = vadd.f32 %v1067_v19, %v976_v18 }
 0x6e5   : > { %1390 = vst [vmem:[%s2219_s28 + $0x30] sm:$0xff] %v1068_v21  ;;  %1809 = vtanh.f32 %v1068_v21  ;;  %v1089_v30 = vmul.f32 %v1068_v21, %v2249_v24 }
 0x6ef   : > { %v1810_v22 = vpop.eup %1809 }
 0x6f0   : > { %v1072_v2 = vpack.c.bf16 %v1810_v22, %v1810_v22 }
 0x6f2   : > { %1637 = vmatmul.mubr.bf16.vlgmr.msra.gmra.mrb[12].mxu1 %v1072_v2 }
 0x7c5   : > { %v1174_v25 = vpop.f32.mrb[12].mxu1 }
 0x7c6   : > { %v1175_v26 = vadd.f32 %v1391_v23, %v1174_v25  ;;  %v1638_v28 = vpop.f32.mrb[13].mxu1 }
 0x7c7   : > { %v1177_v29 = vpop.f32.mrb[14].mxu1 }
 0x7c8   : > { %v1180_v31 = vmul.f32 %v1175_v26, %v2252_v27  ;;  %v1639_v32 = vpop.f32.mrb[15].mxu1 }
 0x7ca   : > { %v1181_v33 = vadd.f32 %v1180_v31, %v1089_v30 }
 0x7cc   : > { %1400 = vst [vmem:[%s2219_s28 + $0x38] sm:$0xff] %v1181_v33  ;;  %1184 = vst [vmem:[#allocation2] sm:$0xff] %v1181_v33 }
 0x7cd   : > { %1910 = shalt.err (!%p1907_p8)
}
 0x7ce   : > { %s1911_s9 = scalar_lea.hbm %s2342_s29, 1024  ;;  %s1915_s11 = scalar_lea.hbm %s2400_s4, 2048 }
 0x7cf   : > { %p1912_p12 = scmp.ne.s32.totalorder %s2342_s29, %s1911_s9  ;;  %p1916_p11 = scmp.lt.u32.totalorder %s2342_s29, %s2400_s4 }
 0x7d0   : > { %p1917_p13 = scmp.lt.u32.totalorder %s1915_s11, %s1911_s9  ;;  %p1919_p1 = scmp.lt.u32.totalorder %s1911_s9, %s2342_s29 }
 0x7d1   : > { %p1913_p7 = pnand %p1912_p12, %p2420_p9 }
 0x7d2   : > { %p1918_p4 = por %p1917_p13, %p1916_p11 }
 0x7d3   : > { %p1914_p6 = pneg %p1913_p7 }
 0x7d4   : > { %p1920_p5 = por %p1919_p1, %p1918_p4 }
 0x7d6   : > { %p1921_p3 = pnand %p1920_p5, %p1914_p6 }
 0x7d8   : > { %1924 = shalt.err (!%p1921_p3)
}
 0x7d9   : > { %s1999_s0 = smov 128   ;;  %s2000_s25 = smov 8  }
 0x7da   : > { %1650 = dma.vmem_to_hbm [thread:$0]  (%p2420_p9), %s2344_s14, 1024, %s2342_s29, %s2349_s20, %s1999_s0, %s1999_s0, %s2000_s25  }
 0x7db PF: > { %s1215_s12 = sand.u32 1, %s1967_s17   ;;  %p2421_p10 = scmp.ne.s32.totalorder %s2409_s27, 0 }
 0x7dc   : > { %p2422_p0 = scmp.ge.s32.totalorder %s1987_s22, 2  ;;  %s1216_s15 = scalar_lea.sflag [#allocation6], %s1215_s12 }
 0x7de   : > { %p1664_p2 = pnand %p2422_p0, %p2421_p10 }
 0x7e0   : > { %1962 = dma.done.wait (!%p1664_p2), %s1216_s15, 1024  }
 0x7e1   : > { %1964 = vsyncadd (!%p1664_p2), %s1216_s15, 4294966272  ;;  %s22_s22 = sadd.s32 1, %s1987_s22   ;;  %s2423_s17 = smov %s1971_s18 }
 0x7e2   : > { %p19_p8 = scmp.ge.s32.totalorder %s22_s22, 4   ;;  %s2424_s18 = smov %s1975_s19 }
 0x7e3   : > { %s2425_s19 = smov %s2169_s30  ;;  %s2426_s20 = smov %s1983_s21 }
 0x7e4   : > { %s2427_s21 = smov %s2429_s24  ;;  %21 = sbr.rel (!%p19_p8) target bundleno = 9 (0x9), region = 109 }
 0x7eb   :  { %1221 = vsyncpa [#allocation5], 1 }
 0x7ec   :  { %1223 = vsyncpa [#allocation5 + $0x1], 1 }
 0x7ed   :  { %1224 = vsyncpa [#allocation8], 1 }
 0x7ee   :  { %1226 = vsyncpa [#allocation8 + $0x1], 1 }
 0x7ef   :  { %1227 = vsyncpa [#allocation6], 1 }
 0x7f0   :  { %1229 = vsyncpa [#allocation6 + $0x1], 1 }

</bundles_post_ra>
